<compile_context>
chip_gen: v5e
topology: v5e:2x2
jax: 0.10.0
libtpu: 0.0.40
codegen_flags: <defaults>
</compile_context>

<pallas_src>
import functools

import jax
import jax.numpy as jnp
from jax import lax
from jax.experimental import pallas as pl
from jax.experimental.pallas import tpu as pltpu


_EPS = 1e-12


def _round_up(x, m):
    return (x + m - 1) // m * m


_VMEM_LIMIT_CACHE = None


def _vmem_limit():
    """~75% of physical VMEM (96 MiB on v5e/v6e, 48 MiB on v7x), safe fallback."""
    global _VMEM_LIMIT_CACHE
    if _VMEM_LIMIT_CACHE is None:
        cap = 64 << 20
        try:
            info = pltpu.get_tpu_info()
            cap = int(getattr(info, "vmem_capacity_bytes", cap) or cap)
        except Exception:
            pass
        _VMEM_LIMIT_CACHE = max(32 << 20, min(cap * 3 // 4, 112 << 20))
    return _VMEM_LIMIT_CACHE


def _padded_bytes(shape):
    """Conservative f32 VMEM footprint of one (sublane, lane)-padded buffer."""
    n, d = shape
    return _round_up(max(n, 1), 8) * _round_up(max(d, 1), 128) * 4


# ------------------------- fused single-block kernel -------------------------

def _make_fused_kernel(shapes):
    """Kernel normalizing len(shapes) whole tensors resident in VMEM."""
    k = len(shapes)

    def kernel(*refs):
        for idx, (n, d) in enumerate(shapes):
            x_ref, o_ref = refs[idx], refs[k + idx]
            x = x_ref[...].astype(jnp.float32)
            col_mean = jnp.sum(x, axis=0, keepdims=True) * (1.0 / n)
            xc = x - col_mean
            ms = jnp.sum(xc * xc, axis=1, keepdims=True) * (1.0 / d) + _EPS
            o_ref[...] = (xc * lax.rsqrt(ms)).astype(o_ref.dtype)

    return kernel


def _fused_small_call(xs):
    """Normalize several small 2-D tensors with a single pallas_call."""
    kernel = _make_fused_kernel(tuple(x.shape for x in xs))

    def full_spec(shp):
        return pl.BlockSpec(shp, lambda i: (0, 0))

    outs = pl.pallas_call(
        kernel,
        out_shape=tuple(jax.ShapeDtypeStruct(x.shape, x.dtype) for x in xs),
        grid_spec=pltpu.PrefetchScalarGridSpec(
            num_scalar_prefetch=0,
            grid=(1,),
            in_specs=[full_spec(x.shape) for x in xs],
            out_specs=tuple(full_spec(x.shape) for x in xs),
        ),
        compiler_params=pltpu.CompilerParams(
            dimension_semantics=("arbitrary",),
            vmem_limit_bytes=_vmem_limit(),
        ),
    )(*xs)
    return list(outs)


# ----------------------------- tiled two-pass path ----------------------------

def _colsum_kernel(x_ref, out_ref, *, tm, tiles_per_split, num_tiles, n_rows):
    """Accumulate per-column sums; rows >= n_rows and duplicate tiles masked."""
    c = pl.program_id(0)   # split (TensorCore) axis, "parallel"
    t = pl.program_id(1)   # reduction axis over row tiles, "arbitrary"

    @pl.when(t == 0)
    def _():
        out_ref[...] = jnp.zeros_like(out_ref)

    lin = c * tiles_per_split + t
    blk = jnp.minimum(lin, num_tiles - 1)            # matches clamped index_map
    rows = blk * tm + lax.broadcasted_iota(jnp.int32, (tm, 1), 0)
    valid = jnp.logical_and(rows < n_rows, lin < num_tiles)
    x = jnp.where(valid, x_ref[...].astype(jnp.float32), 0.0)
    out_ref[...] += jnp.sum(x, axis=0, keepdims=True)    # broadcast to (8, W)


def _norm_rows_kernel(x_ref, mean_ref, o_ref, *, inv_d):
    """Natural layout: subtract ready col mean, per-row RMS normalize."""
    x = x_ref[...].astype(jnp.float32)
    xc = x - mean_ref[...]
    ms = jnp.sum(xc * xc, axis=1, keepdims=True) * inv_d + _EPS
    o_ref[...] = (xc * lax.rsqrt(ms)).astype(o_ref.dtype)


def _norm_packed_kernel(x_ref, mean_ref, o_ref, *, d, inv_d):
    """Lane-dense layout [*, 128] holding g=128//d original rows per row.

    Per-original-row mean-square = segment mean over each d-lane group,
    broadcast back to the group's lanes via one (tile,128)x(128,128) matmul.
    """
    x = x_ref[...].astype(jnp.float32)
    xc = x - mean_ref[...]                    # mean tiled to (1, 128)
    sq = xc * xc
    li = lax.broadcasted_iota(jnp.int32, (128, 128), 0)
    lj = lax.broadcasted_iota(jnp.int32, (128, 128), 1)
    seg = jnp.where((li // d) == (lj // d), inv_d, 0.0).astype(jnp.float32)
    ms = jnp.dot(sq, seg, preferred_element_type=jnp.float32) + _EPS
    o_ref[...] = (xc * lax.rsqrt(ms)).astype(o_ref.dtype)


def _tiled_normalize(x, tm=None):
    n, d = x.shape
    vmem_limit = _vmem_limit()

    # Lane-dense packing for narrow feature dims (D=16/32/64): free row-major
    # reshape [N, D] -> [N*D/128, 128].
    g = 128 // d if (0 < d <= 128 and 128 % d == 0) else 1
    packed = g > 1 and n % g == 0
    if packed:
        xw = x.reshape(n // g, 128)
        n_rows, width = n // g, 128
    else:
        xw = x
        n_rows, width = n, d
    width_pad = _round_up(width, 128)

    # Tile rows: ~4 live tile buffers (in+out double-buffered) in ~60% of VMEM,
    # capped so pass 2 still has >= ~4 tiles for the 2-TC "parallel" split.
    if tm is None:
        budget = (vmem_limit * 3 // 5) // 4
        tm = max(8, (budget // (width_pad * 4)) // 8 * 8)
        tm = min(tm, max(8, _round_up(pl.cdiv(n_rows, 4), 8)))
    tm = max(8, min(_round_up(tm, 8), _round_up(n_rows, 8)))

    num_tiles = pl.cdiv(n_rows, tm)
    n_splits = 2 if num_tiles >= 2 else 1
    tiles_per_split = pl.cdiv(num_tiles, n_splits)

    # ---- Pass 1: per-column sums, split across TensorCores on v7x ----------
    colsum_kernel = functools.partial(
        _colsum_kernel, tm=tm, tiles_per_split=tiles_per_split,
        num_tiles=num_tiles, n_rows=n_rows)

    def in_map(c, t):
        # Clamp out-of-range tiles to the last real tile (kernel masks them).
        return (jnp.minimum(c * tiles_per_split + t, num_tiles - 1), 0)

    partials = pl.pallas_call(
        colsum_kernel,
        out_shape=jax.ShapeDtypeStruct((n_splits * 8, width), jnp.float32),
        grid_spec=pltpu.PrefetchScalarGridSpec(
            num_scalar_prefetch=0,
            grid=(n_splits, tiles_per_split),
            in_specs=[pl.BlockSpec((tm, width), in_map)],
            out_specs=pl.BlockSpec((8, width), lambda c, t: (c, 0)),
        ),
        compiler_params=pltpu.CompilerParams(
            dimension_semantics=("parallel", "arbitrary"),
            vmem_limit_bytes=vmem_limit,
        ),
    )(xw)

    # Tiny wrapper fold: combine the per-core partials and pre-scale by 1/N so
    # pass 2 reads a ready column mean (packed: fold the 128/D lane groups and
    # re-tile the (1, D) mean to the lane-dense (1, 128) layout).
    part = partials.reshape(n_splits, 8, width)[:, 0, :]
    if packed:
        col_mean = part.reshape(-1, d).sum(axis=0, keepdims=True) * (1.0 / n)
        mean_in = jnp.tile(col_mean, (1, g))              # (1, 128)
    else:
        mean_in = part.sum(axis=0, keepdims=True) * (1.0 / n)   # (1, d)

    # ---- Pass 2: center + per-row RMS; row tiles independent -> "parallel" --
    if packed:
        kernel2 = functools.partial(_norm_packed_kernel, d=d, inv_d=1.0 / d)
    else:
        kernel2 = functools.partial(_norm_rows_kernel, inv_d=1.0 / d)

    yw = pl.pallas_call(
        kernel2,
        out_shape=jax.ShapeDtypeStruct((n_rows, width), x.dtype),
        grid_spec=pltpu.PrefetchScalarGridSpec(
            num_scalar_prefetch=0,
            grid=(num_tiles,),
            in_specs=[pl.BlockSpec((tm, width), lambda i: (i, 0)),
                      pl.BlockSpec((1, width), lambda i: (0, 0))],
            out_specs=pl.BlockSpec((tm, width), lambda i: (i, 0)),
        ),
        compiler_params=pltpu.CompilerParams(
            dimension_semantics=("parallel",),
            vmem_limit_bytes=vmem_limit,
        ),
    )(xw, mean_in)

    return yw.reshape(n, d) if packed else yw


# --------------------------------- dispatcher ---------------------------------

def _normalize_group(xs):
    """Normalize a list of 2-D tensors; VMEM-sized ones share fused calls."""
    for x in xs:
        assert x.ndim == 2, "NormLayer.normalize operates on 2-D [N, D] tensors"
    out = [None] * len(xs)
    cap = _vmem_limit() // 3          # (in+out) budget per fused pallas_call

    small_idx = [i for i, x in enumerate(xs) if 2 * _padded_bytes(x.shape) <= cap]

    # Greedy bin-pack fused-eligible tensors so each call stays under `cap`.
    batches, cur, cur_bytes = [], [], 0
    for i in small_idx:
        b = 2 * _padded_bytes(xs[i].shape)
        if cur and cur_bytes + b > cap:
            batches.append(cur)
            cur, cur_bytes = [], 0
        cur.append(i)
        cur_bytes += b
    if cur:
        batches.append(cur)

    for batch in batches:
        ys = _fused_small_call([xs[i] for i in batch])
        for i, y in zip(batch, ys):
            out[i] = y

    # TODO(synk): add a manual-DMA VMEM-cached single-read path for tensors just
    # above the fused threshold before falling back to the two-pass tiled path.
    for i, x in enumerate(xs):
        if out[i] is None:
            out[i] = _tiled_normalize(x)
    return out


def norm_layer(data):
    """Mirror of NormLayer.forward.

    - jax.Array            -> normalized array
    - dict with 'hn','he'  -> normalized dict (stand-in for the PyG Data object)
    - list of the above    -> list; all tensors of the list are batched into as
                              few fused pallas_calls as the VMEM budget allows.
    """
    if isinstance(data, list):
        flat, rebuild = [], []
        for item in data:
            if isinstance(item, dict):
                rebuild.append(("dict", len(flat)))
                flat.extend([item["hn"], item["he"]])
            else:
                rebuild.append(("tensor", len(flat)))
                flat.append(item)
        outs = _normalize_group(flat)
        result = []
        for kind, off in rebuild:
            if kind == "dict":
                result.append({"hn": outs[off], "he": outs[off + 1]})
            else:
                result.append(outs[off])
        return result
    if isinstance(data, dict):
        hn, he = _normalize_group([data["hn"], data["he"]])
        return {"hn": hn, "he": he}
    return _normalize_group([data])[0]


# --------------------------------- reference ----------------------------------

def _reference(x):
    x = x.astype(jnp.float32)
    x = x - x.mean(0, keepdims=True)
    return x * (jnp.mean(x * x, axis=1, keepdims=True) + 1e-12) ** -0.5


if __name__ == "__main__":
    key = jax.random.PRNGKey(0)
    k1, k2, k3, k4, k5, k6, k7 = jax.random.split(key, 7)

    # Small shapes consistent with the module: node features [N, D] / edge
    # features [E, De] of a couple of graphs plus a plain tensor.
    x = jax.random.normal(k1, (8, 32), dtype=jnp.float32)
    hn = jax.random.normal(k2, (16, 32), dtype=jnp.float32)
    he = jax.random.normal(k3, (24, 16), dtype=jnp.float32)
    hn2 = jax.random.normal(k4, (12, 32), dtype=jnp.float32)
    he2 = jax.random.normal(k5, (20, 16), dtype=jnp.float32)

    # Plain-tensor path (fused single-block kernel).
    y = jax.block_until_ready(norm_layer(x))

    # List of "Data objects" + tensor: all 5 tensors batched into one fused call.
    out = jax.block_until_ready(
        norm_layer([{"hn": hn, "he": he}, {"hn": hn2, "he": he2}, x]))

    # Explicitly exercise the tiled two-pass paths with small forced tiles:
    #  - lane-dense packed path (D=32 -> [125, 128] view, ragged packed tile)
    #  - natural path with ragged last tile + duplicate-tile masking (2-split)
    big_packed = jax.random.normal(k6, (500, 32), dtype=jnp.float32)
    big_ragged = jax.random.normal(k7, (301, 32), dtype=jnp.float32)
    y_packed = jax.block_until_ready(_tiled_normalize(big_packed, tm=16))
    y_ragged = jax.block_until_ready(_tiled_normalize(big_ragged, tm=64))

    # Verify against the pure-JAX reference.
    assert jnp.allclose(y, _reference(x), atol=1e-5, rtol=1e-5)
    assert jnp.allclose(out[0]["hn"], _reference(hn), atol=1e-5, rtol=1e-5)
    assert jnp.allclose(out[0]["he"], _reference(he), atol=1e-5, rtol=1e-5)
    assert jnp.allclose(out[1]["hn"], _reference(hn2), atol=1e-5, rtol=1e-5)
    assert jnp.allclose(out[1]["he"], _reference(he2), atol=1e-5, rtol=1e-5)
    assert jnp.allclose(out[2], _reference(x), atol=1e-5, rtol=1e-5)
    assert jnp.allclose(y_packed, _reference(big_packed), atol=1e-5, rtol=1e-5)
    assert jnp.allclose(y_ragged, _reference(big_ragged), atol=1e-5, rtol=1e-5)

    print("KERNEL_OK")
</pallas_src>

<mosaic_0001>
module attributes {stable_mosaic.version = 11 : i64} {
  func.func @kernel(%arg0: i32, %arg1: memref<8x32xf32, #tpu.memory_space<vmem>>, %arg2: memref<8x32xf32, #tpu.memory_space<vmem>>) attributes {dimension_semantics = [#tpu.dimension_semantics<arbitrary>], iteration_bounds = array<i64: 1>, scalar_prefetch = 0 : i64, scratch_operands = 0 : i64, tpu.core_type = #tpu.core_type<tc>, window_params = [{pipeline_mode = #tpu.pipeline_mode<synchronous>, transform_indices = @transform_0, window_bounds = array<i64: 8, 32>}, {pipeline_mode = #tpu.pipeline_mode<synchronous>, transform_indices = @transform_1, window_bounds = array<i64: 8, 32>}]} {
    %c0 = arith.constant 0 : index
    %c0_0 = arith.constant 0 : index
    %0 = vector.load %arg1[%c0, %c0_0] : memref<8x32xf32, #tpu.memory_space<vmem>>, vector<8x32xf32>
    %cst = arith.constant dense<0.000000e+00> : vector<32xf32>
    %1 = vector.multi_reduction <add>, %0, %cst [0] : vector<8x32xf32> to vector<32xf32>
    %2 = vector.shape_cast %1 : vector<32xf32> to vector<1x32xf32>
    %cst_1 = arith.constant 1.250000e-01 : f32
    %3 = vector.broadcast %cst_1 : f32 to vector<1x32xf32>
    %4 = arith.mulf %2, %3 : vector<1x32xf32>
    %5 = vector.broadcast %4 : vector<1x32xf32> to vector<8x32xf32>
    %6 = arith.subf %0, %5 : vector<8x32xf32>
    %7 = arith.mulf %6, %6 : vector<8x32xf32>
    %cst_2 = arith.constant dense<0.000000e+00> : vector<8xf32>
    %8 = vector.multi_reduction <add>, %7, %cst_2 [1] : vector<8x32xf32> to vector<8xf32>
    %9 = vector.shape_cast %8 : vector<8xf32> to vector<8x1xf32>
    %cst_3 = arith.constant 3.125000e-02 : f32
    %10 = vector.broadcast %cst_3 : f32 to vector<8x1xf32>
    %11 = arith.mulf %9, %10 : vector<8x1xf32>
    %cst_4 = arith.constant 9.99999996E-13 : f32
    %12 = vector.broadcast %cst_4 : f32 to vector<8x1xf32>
    %13 = arith.addf %11, %12 : vector<8x1xf32>
    %14 = math.rsqrt %13 : vector<8x1xf32>
    %15 = vector.broadcast %14 : vector<8x1xf32> to vector<8x32xf32>
    %16 = arith.mulf %6, %15 : vector<8x32xf32>
    %c0_5 = arith.constant 0 : index
    %c0_6 = arith.constant 0 : index
    %17 = vector.load %arg2[%c0_5, %c0_6] : memref<8x32xf32, #tpu.memory_space<vmem>>, vector<8x32xf32>
    tpu.vector_store %arg2[%c0_5, %c0_6], %16 {strides = array<i32>} : memref<8x32xf32, #tpu.memory_space<vmem>>, vector<8x32xf32>,
    return
  }
  func.func @transform_0(%arg0: i32) -> (i32, i32) {
    %c0_i32 = arith.constant 0 : i32
    %c0_i32_0 = arith.constant 0 : i32
    %c0_i32_1 = arith.constant 0 : i32
    return %c0_i32, %c0_i32_0 : i32, i32
  }
  func.func @transform_1(%arg0: i32) -> (i32, i32) {
    %c0_i32 = arith.constant 0 : i32
    %c0_i32_0 = arith.constant 0 : i32
    %c0_i32_1 = arith.constant 0 : i32
    return %c0_i32, %c0_i32_0 : i32, i32
  }
}

</mosaic_0001>

<bundles_post_ra>
// kernel: tpu_custom_call.1
= control target key start
LH: loop header
LB: loop body
LE: loop exit
PB: predicated region body
PF: predicated region fallthrough
CT: control target
= control target key end

     0   :  { %6 = vsyncpa [#allocation3], 0  ;;  %s146_s0 = inlined_call_operand.hbm [shape: f32[8,32], index: 0, kind: input, shape index: {}]   ;;  %s147_s1 = inlined_call_operand.hbm [shape: f32[8,32], index: 1, kind: output, shape index: {}]  }
   0x1   :  { %7 = vsyncpa [#allocation4], 0  ;;  %s13_s8 = sshll.u32 %s146_s0, 4  ;;  %s125_s9 = smov [#allocation2]   ;;  %s14_s8 = int_to_ptr.hbm [resolvable:$true] %s13_s8 }
   0x2   :  { %s15_s10 = sshll.u32 %s125_s9, 4  ;;  %s16_s10 = int_to_ptr.vmem [resolvable:$true] %s15_s10 }
   0x3   :  { %18 = dma.hbm_to_vmem [thread:$0]  %s14_s8, 128, %s16_s10, [#allocation3]  }
   0x4   :  { %121 = dma.done.wait [#allocation3], 128  }
   0x5   :  { %122 = vsyncadd [#allocation3], 4294967168  ;;  %vm24_vm0 = vcmask 261120   ;;  %v23_v0 = vld [vmem:[#allocation2] sm:$0xff]  ;;  %s126_s0 = smov [#allocation5]   ;;  %s59_s14 = sshll.u32 %s147_s1, 4  ;;  %s60_s14 = int_to_ptr.hbm [resolvable:$true] %s59_s14 }
   0x6   :  { %v25_v1 = vsel %vm24_vm0, %v23_v0, 0.0  ;;  %s57_s11 = sshll.u32 %s126_s0, 4  ;;  %s58_s11 = int_to_ptr.vmem [resolvable:$true] %s57_s11 }
   0x7   :  { %v26_v2 = vrot.slane %v25_v1, 4 }
   0x9   :  { %v27_v3 = vadd.f32 %v26_v2, %v25_v1 }
   0xb   :  { %v28_v4 = vrot.slane %v27_v3, 2 }
   0xd   :  { %v29_v5 = vadd.f32 %v28_v4, %v27_v3 }
   0xf   :  { %v30_v6 = vrot.slane %v29_v5, 1 }
  0x11   :  { %v31_v7 = vadd.f32 %v30_v6, %v29_v5 }
  0x13   :  { %v32_v8 = vmul.f32 0.125, %v31_v7 }
  0x15   :  { %v33_v9 = vsub.f32 %v23_v0, %v32_v8 }
  0x17   :  { %v34_v10 = vmul.f32 %v33_v9, %v33_v9 }
  0x19   :  { %v35_v11 = vsel %vm24_vm0, %v34_v10, 0.0 }
  0x1a   :  { %36 = vadd.xlane.f32.xlu0 %v35_v11 }
  0x8d   :  { %v37_v12 = vpop.xlane.xlu0 %36 }
  0x8e   :  { %v38_v13 = vmul.f32 0.03125, %v37_v12 }
  0x90   :  { %v39_v14 = vadd.f32 1e-12, %v38_v13 }
  0x92   :  { %71 = vrsqrt.f32 %v39_v14  ;;  %vm46_vm2 = vweird.f32 %v39_v14 }
  0x98   :  { %v72_v15 = vpop.eup %71 }
  0x99   :  { %v41_v16 = vmul.f32 %v72_v15, %v39_v14  ;;  %vm47_vm1 = vweird.f32 %v72_v15 }
  0x9a   :  { %vm48_vm3 = vmor %vm46_vm2, %vm47_vm1 }
  0x9b   :  { %v42_v17 = vmul.f32 %v72_v15, %v41_v16 }
  0x9d   :  { %v43_v18 = vmul.f32 0.5, %v42_v17 }
  0x9f   :  { %v44_v19 = vsub.f32 1.5, %v43_v18 }
  0xa1   :  { %v45_v20 = vmul.f32 %v72_v15, %v44_v19 }
  0xa3   :  { %v49_v21 = vsel %vm48_vm3, %v72_v15, %v45_v20 }
  0xa4   :  { %v50_v22 = vmul.f32 %v49_v21, %v33_v9 }
  0xa6   :  { %51 = vst.msk [vmem:[#allocation5] sm:$0xff] %vm24_vm0, %v50_v22 }
  0xa7   :  { %62 = dma.vmem_to_hbm [thread:$0]  %s58_s11, 128, %s60_s14, [#allocation4]  }
  0xa8   :  { %123 = dma.done.wait [#allocation4], 128  }
  0xa9   :  { %124 = vsyncadd [#allocation4], 4294967168 }
  0xaa   :  { %67 = vsyncpa [#allocation3], 1 }
  0xab   :  { %68 = vsyncpa [#allocation4], 1 }

</bundles_post_ra>
